<compile_context>
chip_gen: v6e
topology: v6e:2x2x1
jax: 0.10.0
libtpu: 0.0.40
codegen_flags: <defaults>
</compile_context>

<pallas_src>
import functools

import jax
import jax.numpy as jnp
import numpy as np
from jax.experimental import pallas as pl
from jax.experimental.pallas import tpu as pltpu


_LANE = 128
_SUBLANE = 8
_MAX_TILE_LANES = 2048                    # 512-1024 lanes already ~85% of HBM roofline
_TILE_BYTES_BUDGET = 16 * 1024 * 1024     # pass-2 double-buffered (x + out) slabs
_VMEM_LIMIT_TWO_PASS = 32 * 1024 * 1024   # safe on v5e/v6e (128 MiB) and v7x (64 MiB)


def _round_up(v, m):
    return -(-v // m) * m


def _vmem_capacity_bytes():
    """Queried per-core VMEM capacity; conservative fallback = v7x's 64 MiB."""
    try:
        cap = getattr(pltpu.get_tpu_info(), "vmem_capacity_bytes", None)
        if cap:
            return int(cap)
    except Exception:
        pass
    return 64 * 1024 * 1024


def _choose_s_tile(C, S):
    """Lane-dense S tile: big enough to hit the HBM roofline, small enough that
    the pipeline has several steps to overlap DMA with compute/writeback."""
    bytes_per_lane = 16 * _round_up(C, _SUBLANE)          # (x + out) * 2 buffers * 4 B
    cap = max(_LANE, (_TILE_BYTES_BUDGET // bytes_per_lane) // _LANE * _LANE)
    s_tile = min(cap, _MAX_TILE_LANES, _round_up(S, _LANE))
    return int(max(s_tile, _LANE))


# ---------------------------------------------------------------------------
# Fused single-pass kernel (whole (C, S) slab resident per batch element)
# ---------------------------------------------------------------------------
def _fused_kernel(inv_s, x_ref, w1t_ref, b1_ref, w2_ref, b2_ref, ws_ref, bs_ref, o_ref):
    x = x_ref[0]                                                      # (C, S)
    mean_col = jnp.sum(x, axis=1, keepdims=True) * inv_s              # (C, 1)
    # Tiny cSE matvecs on VPU/XLU (a 1-column MXU matmul only pays push/pop latency).
    z_row = jnp.sum(mean_col * w1t_ref[...], axis=0, keepdims=True) + b1_ref[...]   # (1, Cr)
    z_row = jnp.maximum(z_row, 0.0)                                                  # ReLU
    c_col = jnp.sum(w2_ref[...] * z_row, axis=1, keepdims=True) + b2_ref[...]        # (C, 1)
    c_att = jax.nn.sigmoid(c_col)                                     # (C, 1)
    # sSE 1x1x1 conv = channel reduction on the otherwise-idle MXU.
    s_log = jnp.dot(ws_ref[...], x, preferred_element_type=jnp.float32) + bs_ref[0, 0]
    s_att = jax.nn.sigmoid(s_log)                                     # (1, S)
    # x*cSE + x*sSE == x*(cSE + sSE): one fewer VPU multiply per element.
    o_ref[0] = x * (c_att + s_att)


# ---------------------------------------------------------------------------
# Two-pass fallback kernels (large feature maps)
# ---------------------------------------------------------------------------
def _csum_kernel(S_total, s_tile, n_k, x_ref, psum_ref):
    """Pass 1: per-(batch, spatial-split) channel sums; output block resident
    across the innermost ("arbitrary") tile axis."""
    k = pl.program_id(2)

    @pl.when(k == 0)
    def _init():
        psum_ref[...] = jnp.zeros_like(psum_ref)

    # Tail columns of a partial / clamped edge block are stale VMEM, so mask by
    # global column index before accumulating (select, not multiply: NaN-safe).
    start = (pl.program_id(1) * n_k + k) * s_tile
    cols = jax.lax.broadcasted_iota(
        jnp.int32, (x_ref.shape[1], x_ref.shape[2]), 1) + start
    xm = jnp.where(cols < S_total, x_ref[0], 0.0)
    psum_ref[0] += jnp.sum(xm, axis=1, keepdims=True)                 # (C, 1)


def _combine_kernel(x_ref, catt_ref, ws_ref, bs_ref, o_ref):
    """Pass 2: S-tiled combine; sSE computed on the fly from the x tile.
    Garbage tail columns in the edge block only feed o_ref, whose edge-block
    writeback is masked by Pallas, so they never reach HBM."""
    x = x_ref[0]                                                      # (C, s_tile)
    s_log = jnp.dot(ws_ref[...], x, preferred_element_type=jnp.float32) + bs_ref[0, 0]
    s_att = jax.nn.sigmoid(s_log)                                     # (1, s_tile)
    o_ref[0] = x * (catt_ref[0] + s_att)


# ---------------------------------------------------------------------------
# Wrapper
# ---------------------------------------------------------------------------
def scse_forward(x_ncdhw, w1, b1, w2, b2, ws, bs, *,
                 force_two_pass=False, s_tile_override=None):
    """x_ncdhw: (N, C, D, H, W) float32.  Weights are the 1x1x1-conv params
    squeezed to 2D: w1 (C/r, C), b1 (C/r, 1), w2 (C, C/r), b2 (C, 1),
    ws (1, C), bs (1, 1)."""
    N, C, D, H, W = x_ncdhw.shape
    S = D * H * W
    Cr = w1.shape[0]
    x = x_ncdhw.reshape(N, C, S)          # free reshape (contiguous), no padding

    vmem_cap = _vmem_capacity_bytes()
    # Double-buffered (x + out) f32 slabs for one batch element, tile-padded.
    fused_bytes = 16 * _round_up(C, _SUBLANE) * _round_up(S, _LANE)
    use_fused = (not force_two_pass) and fused_bytes <= int(0.6 * vmem_cap)

    if use_fused:
        # ---- Single fused pass: x read once, out written once. ----
        w1t = jnp.transpose(w1)                  # (C, Cr)
        b1r = jnp.reshape(b1, (1, Cr))           # (1, Cr)
        vmem_limit = int(min(0.75 * vmem_cap,
                             max(32 * 1024 * 1024, fused_bytes + 8 * 1024 * 1024)))
        out = pl.pallas_call(
            functools.partial(_fused_kernel, 1.0 / float(S)),
            out_shape=jax.ShapeDtypeStruct((N, C, S), jnp.float32),
            grid_spec=pltpu.PrefetchScalarGridSpec(
                num_scalar_prefetch=0,
                grid=(N,),
                in_specs=[
                    pl.BlockSpec((1, C, S), lambda n: (n, 0, 0)),       # x slab
                    pl.BlockSpec((C, Cr), lambda n: (0, 0)),            # w1^T
                    pl.BlockSpec((1, Cr), lambda n: (0, 0)),            # b1 (row)
                    pl.BlockSpec((C, Cr), lambda n: (0, 0)),            # w2
                    pl.BlockSpec((C, 1), lambda n: (0, 0)),             # b2
                    pl.BlockSpec((1, C), lambda n: (0, 0)),             # ws
                    pl.BlockSpec(memory_space=pltpu.MemorySpace.SMEM),  # bs scalar
                ],
                out_specs=pl.BlockSpec((1, C, S), lambda n: (n, 0, 0)),
            ),
            compiler_params=pltpu.CompilerParams(
                dimension_semantics=("parallel",),
                vmem_limit_bytes=vmem_limit),
        )(x, w1t, b1r, w2, b2, ws, bs)
        return out.reshape(N, C, D, H, W)

    # ---- Fallback: two passes, S-tiled (large feature maps). ----
    if s_tile_override:
        s_tile = _round_up(int(s_tile_override), _LANE)
    else:
        s_tile = _choose_s_tile(C, S)
    n_s = pl.cdiv(S, s_tile)
    P = 2 if n_s >= 2 else 1             # spatial split: both v7x cores busy even at N==1
    n_k = pl.cdiv(n_s, P)

    # Pass 1: per-(n, split) channel sums (x read once; tiny output).
    psums = pl.pallas_call(
        functools.partial(_csum_kernel, S, s_tile, n_k),
        out_shape=jax.ShapeDtypeStruct((N * P, C, 1), jnp.float32),
        grid_spec=pltpu.PrefetchScalarGridSpec(
            num_scalar_prefetch=0,
            grid=(N, P, n_k),
            in_specs=[
                pl.BlockSpec(
                    (1, C, s_tile),
                    # Clamp out-of-range tile indices (uneven P split); their
                    # contribution is masked to zero in-kernel.
                    lambda n, p, k: (n, 0, jnp.minimum(p * n_k + k, n_s - 1))),
            ],
            out_specs=pl.BlockSpec((1, C, 1), lambda n, p, k: (n * P + p, 0, 0)),
        ),
        compiler_params=pltpu.CompilerParams(
            dimension_semantics=("parallel", "parallel", "arbitrary"),
            vmem_limit_bytes=_VMEM_LIMIT_TWO_PASS),
    )(x)

    # Tiny cSE MLP on (N, C): negligible HBM traffic, let XLA spread it.
    mean = jnp.sum(psums.reshape(N, P, C), axis=1) / float(S)         # (N, C)
    z = jnp.maximum(mean @ w1.T + b1[:, 0], 0.0)                      # (N, Cr)
    c_att = jax.nn.sigmoid(z @ w2.T + b2[:, 0])[:, :, None]           # (N, C, 1)

    # Pass 2: sSE + fused combine; both grid axes independent -> megacore shards.
    out = pl.pallas_call(
        _combine_kernel,
        out_shape=jax.ShapeDtypeStruct((N, C, S), jnp.float32),
        grid_spec=pltpu.PrefetchScalarGridSpec(
            num_scalar_prefetch=0,
            grid=(N, n_s),
            in_specs=[
                pl.BlockSpec((1, C, s_tile), lambda n, s: (n, 0, s)),   # x tile
                pl.BlockSpec((1, C, 1), lambda n, s: (n, 0, 0)),        # c_att[n]
                pl.BlockSpec((1, C), lambda n, s: (0, 0)),              # ws
                pl.BlockSpec(memory_space=pltpu.MemorySpace.SMEM),      # bs scalar
            ],
            out_specs=pl.BlockSpec((1, C, s_tile), lambda n, s: (n, 0, s)),
        ),
        compiler_params=pltpu.CompilerParams(
            dimension_semantics=("parallel", "parallel"),
            vmem_limit_bytes=_VMEM_LIMIT_TWO_PASS),
    )(x, c_att, ws, bs)

    return out.reshape(N, C, D, H, W)


def scse_reference(x, w1, b1, w2, b2, ws, bs):
    """Plain-JAX reference matching the PyTorch forward."""
    mean = jnp.mean(x, axis=(2, 3, 4))                      # (N, C)
    z = jnp.maximum(mean @ w1.T + b1[:, 0], 0.0)            # (N, Cr)
    c_att = jax.nn.sigmoid(z @ w2.T + b2[:, 0])             # (N, C)
    s_att = jax.nn.sigmoid(
        jnp.einsum("ncdhw,c->ndhw", x, ws[0]) + bs[0, 0])   # (N, D, H, W)
    return (x * c_att[:, :, None, None, None]
            + x * s_att[:, None, :, :, :])


if __name__ == "__main__":
    # Shapes consistent with SCSEModule(in_channels=32, reduction=16)
    N, C, D, H, W = 2, 32, 4, 4, 4
    reduction = 16
    Cr = C // reduction  # 2

    key = jax.random.PRNGKey(0)
    kx, k1, k2, k3, k4, k5, k6, kx2 = jax.random.split(key, 8)

    x = jax.random.normal(kx, (N, C, D, H, W), dtype=jnp.float32)

    # Deterministic synthetic parameters (1x1x1 conv weights, squeezed to 2D).
    w1 = jax.random.normal(k1, (Cr, C), dtype=jnp.float32) * 0.2   # cSE conv1 weight
    b1 = jax.random.normal(k2, (Cr, 1), dtype=jnp.float32) * 0.1   # cSE conv1 bias
    w2 = jax.random.normal(k3, (C, Cr), dtype=jnp.float32) * 0.2   # cSE conv2 weight
    b2 = jax.random.normal(k4, (C, 1), dtype=jnp.float32) * 0.1    # cSE conv2 bias
    ws = jax.random.normal(k5, (1, C), dtype=jnp.float32) * 0.2    # sSE conv weight
    bs = jax.random.normal(k6, (1, 1), dtype=jnp.float32) * 0.1    # sSE conv bias

    # Fast path: fused single-pass (VMEM-resident slab).
    out = jax.block_until_ready(scse_forward(x, w1, b1, w2, b2, ws, bs))
    ref = scse_reference(x, w1, b1, w2, b2, ws, bs)
    np.testing.assert_allclose(np.asarray(out), np.asarray(ref), rtol=1e-5, atol=1e-5)

    # Fallback path: two-pass, forced, with S not a multiple of 128 and a small
    # tile so tail masking, the uneven P-split clamp, and masked edge writeback
    # are all exercised.
    x2 = jax.random.normal(kx2, (1, C, 5, 8, 8), dtype=jnp.float32)
    out2 = jax.block_until_ready(
        scse_forward(x2, w1, b1, w2, b2, ws, bs,
                     force_two_pass=True, s_tile_override=128))
    ref2 = scse_reference(x2, w1, b1, w2, b2, ws, bs)
    np.testing.assert_allclose(np.asarray(out2), np.asarray(ref2), rtol=1e-5, atol=1e-5)

    print("KERNEL_OK")
</pallas_src>

<mosaic_0001>
module attributes {stable_mosaic.version = 11 : i64} {
  func.func @_fused_kernel(%arg0: i32, %arg1: memref<1x32x64xf32, #tpu.memory_space<vmem>>, %arg2: memref<32x2xf32, #tpu.memory_space<vmem>>, %arg3: memref<1x2xf32, #tpu.memory_space<vmem>>, %arg4: memref<32x2xf32, #tpu.memory_space<vmem>>, %arg5: memref<32x1xf32, #tpu.memory_space<vmem>>, %arg6: memref<1x32xf32, #tpu.memory_space<vmem>>, %arg7: memref<1x1xf32, #tpu.memory_space<smem>>, %arg8: memref<1x32x64xf32, #tpu.memory_space<vmem>>) attributes {dimension_semantics = [#tpu.dimension_semantics<parallel>], iteration_bounds = array<i64: 2>, scalar_prefetch = 0 : i64, scratch_operands = 0 : i64, tpu.core_type = #tpu.core_type<tc>, window_params = [{transform_indices = @transform_0, window_bounds = array<i64: 1, 32, 64>}, {pipeline_mode = #tpu.pipeline_mode<synchronous>, transform_indices = @transform_1, window_bounds = array<i64: 32, 2>}, {pipeline_mode = #tpu.pipeline_mode<synchronous>, transform_indices = @transform_2, window_bounds = array<i64: 1, 2>}, {pipeline_mode = #tpu.pipeline_mode<synchronous>, transform_indices = @transform_3, window_bounds = array<i64: 32, 2>}, {pipeline_mode = #tpu.pipeline_mode<synchronous>, transform_indices = @transform_4, window_bounds = array<i64: 32, 1>}, {pipeline_mode = #tpu.pipeline_mode<synchronous>, transform_indices = @transform_5, window_bounds = array<i64: 1, 32>}, {transform_indices = @transform_6, window_bounds = array<i64: 1, 1>}, {transform_indices = @transform_7, window_bounds = array<i64: 1, 32, 64>}]} {
    %c0 = arith.constant 0 : index
    %c0_0 = arith.constant 0 : index
    %c0_1 = arith.constant 0 : index
    %0 = vector.load %arg1[%c0, %c0_0, %c0_1] : memref<1x32x64xf32, #tpu.memory_space<vmem>>, vector<1x32x64xf32>
    %1 = vector.shape_cast %0 : vector<1x32x64xf32> to vector<32x64xf32>
    %cst = arith.constant dense<0.000000e+00> : vector<32xf32>
    %2 = vector.multi_reduction <add>, %1, %cst [1] : vector<32x64xf32> to vector<32xf32>
    %3 = vector.shape_cast %2 : vector<32xf32> to vector<32x1xf32>
    %cst_2 = arith.constant 1.562500e-02 : f32
    %4 = vector.broadcast %cst_2 : f32 to vector<32x1xf32>
    %5 = arith.mulf %3, %4 : vector<32x1xf32>
    %c0_3 = arith.constant 0 : index
    %c0_4 = arith.constant 0 : index
    %6 = vector.load %arg2[%c0_3, %c0_4] : memref<32x2xf32, #tpu.memory_space<vmem>>, vector<32x2xf32>
    %7 = vector.broadcast %5 : vector<32x1xf32> to vector<32x2xf32>
    %8 = arith.mulf %7, %6 : vector<32x2xf32>
    %cst_5 = arith.constant dense<0.000000e+00> : vector<2xf32>
    %9 = vector.multi_reduction <add>, %8, %cst_5 [0] : vector<32x2xf32> to vector<2xf32>
    %10 = vector.shape_cast %9 : vector<2xf32> to vector<1x2xf32>
    %c0_6 = arith.constant 0 : index
    %c0_7 = arith.constant 0 : index
    %11 = vector.load %arg3[%c0_6, %c0_7] : memref<1x2xf32, #tpu.memory_space<vmem>>, vector<1x2xf32>
    %12 = arith.addf %10, %11 : vector<1x2xf32>
    %cst_8 = arith.constant 0.000000e+00 : f32
    %13 = vector.broadcast %cst_8 : f32 to vector<1x2xf32>
    %14 = arith.maximumf %12, %13 : vector<1x2xf32>
    %c0_9 = arith.constant 0 : index
    %c0_10 = arith.constant 0 : index
    %15 = vector.load %arg4[%c0_9, %c0_10] : memref<32x2xf32, #tpu.memory_space<vmem>>, vector<32x2xf32>
    %16 = vector.broadcast %14 : vector<1x2xf32> to vector<32x2xf32>
    %17 = arith.mulf %15, %16 : vector<32x2xf32>
    %cst_11 = arith.constant dense<0.000000e+00> : vector<32xf32>
    %18 = vector.multi_reduction <add>, %17, %cst_11 [1] : vector<32x2xf32> to vector<32xf32>
    %19 = vector.shape_cast %18 : vector<32xf32> to vector<32x1xf32>
    %c0_12 = arith.constant 0 : index
    %c0_13 = arith.constant 0 : index
    %20 = vector.load %arg5[%c0_12, %c0_13] : memref<32x1xf32, #tpu.memory_space<vmem>>, vector<32x1xf32>
    %21 = arith.addf %19, %20 : vector<32x1xf32>
    %22 = arith.negf %21 : vector<32x1xf32>
    %23 = math.exp %22 : vector<32x1xf32>
    %cst_14 = arith.constant 1.000000e+00 : f32
    %24 = vector.broadcast %cst_14 : f32 to vector<32x1xf32>
    %25 = arith.addf %24, %23 : vector<32x1xf32>
    %26 = arith.divf %24, %25 : vector<32x1xf32>
    %c0_15 = arith.constant 0 : index
    %c0_16 = arith.constant 0 : index
    %27 = vector.load %arg6[%c0_15, %c0_16] : memref<1x32xf32, #tpu.memory_space<vmem>>, vector<1x32xf32>
    %cst_17 = arith.constant dense<0.000000e+00> : vector<1x64xf32>
    %28 = tpu.matmul %27, %1, %cst_17 {dimension_numbers = #tpu.dot_dimension_numbers<[1], [0], [0], [1], [0, 0, 1, 1], [], []>} : vector<1x32xf32>, vector<32x64xf32>, vector<1x64xf32> -> vector<1x64xf32>
    %c0_18 = arith.constant 0 : index
    %c0_19 = arith.constant 0 : index
    %29 = memref.load %arg7[%c0_18, %c0_19] : memref<1x1xf32, #tpu.memory_space<smem>>
    %30 = vector.broadcast %29 : f32 to vector<1x64xf32>
    %31 = arith.addf %28, %30 : vector<1x64xf32>
    %32 = arith.negf %31 : vector<1x64xf32>
    %33 = math.exp %32 : vector<1x64xf32>
    %cst_20 = arith.constant 1.000000e+00 : f32
    %34 = vector.broadcast %cst_20 : f32 to vector<1x64xf32>
    %35 = arith.addf %34, %33 : vector<1x64xf32>
    %36 = arith.divf %34, %35 : vector<1x64xf32>
    %37 = vector.broadcast %26 : vector<32x1xf32> to vector<32x64xf32>
    %38 = vector.broadcast %36 : vector<1x64xf32> to vector<32x64xf32>
    %39 = arith.addf %37, %38 : vector<32x64xf32>
    %40 = arith.mulf %1, %39 : vector<32x64xf32>
    %c0_21 = arith.constant 0 : index
    %c0_22 = arith.constant 0 : index
    %c0_23 = arith.constant 0 : index
    %41 = vector.load %arg8[%c0_21, %c0_22, %c0_23] : memref<1x32x64xf32, #tpu.memory_space<vmem>>, vector<1x32x64xf32>
    %42 = vector.shape_cast %41 : vector<1x32x64xf32> to vector<32x64xf32>
    %43 = vector.shape_cast %40 : vector<32x64xf32> to vector<1x32x64xf32>
    tpu.vector_store %arg8[%c0_21, %c0_22, %c0_23], %43 {strides = array<i32>} : memref<1x32x64xf32, #tpu.memory_space<vmem>>, vector<1x32x64xf32>,
    return
  }
  func.func @transform_0(%arg0: i32) -> (i32, i32, i32) {
    %c0_i32 = arith.constant 0 : i32
    %c0_i32_0 = arith.constant 0 : i32
    %c0_i32_1 = arith.constant 0 : i32
    return %arg0, %c0_i32, %c0_i32_0 : i32, i32, i32
  }
  func.func @transform_1(%arg0: i32) -> (i32, i32) {
    %c0_i32 = arith.constant 0 : i32
    %c0_i32_0 = arith.constant 0 : i32
    %c0_i32_1 = arith.constant 0 : i32
    return %c0_i32, %c0_i32_0 : i32, i32
  }
  func.func @transform_2(%arg0: i32) -> (i32, i32) {
    %c0_i32 = arith.constant 0 : i32
    %c0_i32_0 = arith.constant 0 : i32
    %c0_i32_1 = arith.constant 0 : i32
    return %c0_i32, %c0_i32_0 : i32, i32
  }
  func.func @transform_3(%arg0: i32) -> (i32, i32) {
    %c0_i32 = arith.constant 0 : i32
    %c0_i32_0 = arith.constant 0 : i32
    %c0_i32_1 = arith.constant 0 : i32
    return %c0_i32, %c0_i32_0 : i32, i32
  }
  func.func @transform_4(%arg0: i32) -> (i32, i32) {
    %c0_i32 = arith.constant 0 : i32
    %c0_i32_0 = arith.constant 0 : i32
    %c0_i32_1 = arith.constant 0 : i32
    return %c0_i32, %c0_i32_0 : i32, i32
  }
  func.func @transform_5(%arg0: i32) -> (i32, i32) {
    %c0_i32 = arith.constant 0 : i32
    %c0_i32_0 = arith.constant 0 : i32
    %c0_i32_1 = arith.constant 0 : i32
    return %c0_i32, %c0_i32_0 : i32, i32
  }
  func.func @transform_6(%arg0: i32) -> (i32, i32) {
    %c0_i32 = arith.constant 0 : i32
    %c0_i32_0 = arith.constant 0 : i32
    %c0_i32_1 = arith.constant 0 : i32
    return %c0_i32, %c0_i32_0 : i32, i32
  }
  func.func @transform_7(%arg0: i32) -> (i32, i32, i32) {
    %c0_i32 = arith.constant 0 : i32
    %c0_i32_0 = arith.constant 0 : i32
    %c0_i32_1 = arith.constant 0 : i32
    return %arg0, %c0_i32, %c0_i32_0 : i32, i32, i32
  }
}

</mosaic_0001>

<bundles_post_ra>
// kernel: tpu_custom_call.1
= control target key start
LH: loop header
LB: loop body
LE: loop exit
PB: predicated region body
PF: predicated region fallthrough
CT: control target
= control target key end

     0   :  { %s975_s0 = inlined_call_operand.vmem [shape: f32[2,32,64], index: 0, kind: input, shape index: {}]   ;;  %s976_s1 = inlined_call_operand.vmem [shape: f32[32,2], index: 1, kind: input, shape index: {}]   ;;  %s977_s2 = inlined_call_operand.vmem [shape: f32[1,2], index: 2, kind: input, shape index: {}]   ;;  %s978_s3 = inlined_call_operand.vmem [shape: f32[32,2], index: 3, kind: input, shape index: {}]   ;;  %s979_s4 = inlined_call_operand.vmem [shape: f32[32,1], index: 4, kind: input, shape index: {}]   ;;  %s980_s5 = inlined_call_operand.vmem [shape: f32[1,32], index: 5, kind: input, shape index: {}]   ;;  %s981_s6 = inlined_call_operand.<no memory space> [shape: f32[1,1], index: 6, kind: input, shape index: {}]   ;;  %s982_s7 = inlined_call_operand.hbm [shape: f32[2,32,64], index: 7, kind: output, shape index: {}]  }
   0x1   :  { %12 = sst [smem:[#allocation2]] %s981_s6 }
   0x2   :  { %13 = vsyncpa [#allocation4], 0 }
   0x3   :  { %15 = vsyncpa [#allocation4 + $0x1], 0  ;;  %s788_s26 = smov 0   ;;  %s790_s27 = smov 0  }
   0x4   :  { %s792_s28 = smov 0   ;;  %s794_s29 = smov 0  }
   0x5 LB: > { %s809_s6 = sadd.s32 4294967295, %s737_s29   ;;  %s575_s30 = sadd.s32 4294967294, %s737_s29   ;;  %s737_s29 = sphi %s794_s29, %s988_s29   ;;  %s733_s28 = sphi %s792_s28, %s987_s28   ;;  %s729_s27 = sphi %s790_s27, %s986_s27   ;;  %s725_s26 = sphi %s788_s26, %s985_s26  }
   0x6   : > { %s813_s8 = sadd.s32 1, %s737_s29   ;;  %s180_s9 = sadd.s32 1, %s733_s28 }
   0x7   : > { %s177_s10 = ssub.s32 %s737_s29, %s813_s8  ;;  %p190_p0 = scmp.ne.s32.totalorder %s733_s28, %s729_s27 }
   0x8   : > { %p178_p1 = scmp.eq.s32.totalorder %s177_s10, 0  ;;  %p191_p2 = scmp.eq.s32.totalorder %s809_s6, 1 }
   0x9   : > { %p196_p3 = scmp.ne.s32.totalorder %s729_s27, %s725_s26  ;;  %p197_p4 = scmp.eq.s32.totalorder %s575_s30, 1 }
   0xa   : > { %s824_s11 = scalar_select %p178_p1, %s733_s28, %s180_s9  }
   0xb   : > { %p826_p5 = por %p191_p2, %p190_p0  ;;  %p830_p6 = por %p197_p4, %p196_p3 }
   0xc   : > { %p578_p7 = scmp.ge.s32.totalorder %s737_s29, 1  ;;  %p241_p8 = scmp.lt.s32.totalorder %s737_s29, 3 }
   0xe   : > { %p242_p9 = pnand %p578_p7, %p241_p8 }
   0xf   : > { %p273_p10 = scmp.lt.s32.totalorder (!%p242_p9), %s809_s6, 1  ;;  %s381_s17 = sld [smem:[#allocation2]] (!%p242_p9) }
  0x10   : > { %245 = sbr.rel (%p242_p9) target bundleno = 524 (0x20c), region = 48  ;;  %s594_s22 = sshll.u32 (!%p242_p9), %s809_s6, 9 }
  0x11   : > { %s929_s25 = scalar_lea.hbm (!%p242_p9), %s982_s7, %s594_s22  ;;  %s742_s9 = smov (!%p242_p9), [#allocation3]  }
  0x12   : > { %s681_s10 = sshll.u32 (!%p242_p9), %s742_s9, 4  ;;  %s682_s10 = int_to_ptr.vmem [resolvable:$false] %s681_s10 }
  0x15   : > { %s274_s14 = scalar_select %p273_p10, %s809_s6, 1  ;;  %vm282_vm0 = vcmask 523264   ;;  %v739_v8 = vmov 0.0   ;;  %vm740_vm1 = vmmov 0   ;;  %v380_v9 = vld [vmem:[%s980_s5] sm:$0x1]  ;;  %v328_v36 = vlaneseq }
  0x16   : > { %600 = vmatprep.subr.mxu0 %v739_v8  ;;  %608 = vmatprep.mubr.msk.f32.mxu0 %vm740_vm1, %v739_v8  ;;  %vm383_vm2 = vcmask 261120   ;;  %v299_v13 = vld [vmem:[%s976_s1] sm:$0xff]  ;;  %v301_v15 = vld [vmem:[%s976_s1 + $0x10] sm:$0xff]  ;;  %v300_v16 = vld [vmem:[%s976_s1 + $0x8] sm:$0xff]  ;;  %vm307_vm3 = vcmask 15360   ;;  %v741_v58 = vmov 0  }
  0x17   : > { %s593_s15 = sshll.u32 %s274_s14, 5  ;;  %v302_v18 = vld [vmem:[%s976_s1 + $0x18] sm:$0xff]  ;;  %v880_v39 = vshrl.u32 %v328_v36, 7  ;;  %v321_v40 = vld [vmem:[%s977_s2] sm:$0x1]  ;;  %v325_v45 = vld [vmem:[%s978_s3 + $0x8] sm:$0xff]  ;;  %656 = vset.pattern.permute.xlu1 %v741_v58  ;;  %655 = vset.pattern.permute.xlu0 %v741_v58 }
  0x18   : > { %s277_s18 = scalar_lea.vmem %s975_s0, %s593_s15  ;;  %v324_v46 = vld [vmem:[%s978_s3] sm:$0xff]  ;;  %v327_v48 = vld [vmem:[%s978_s3 + $0x18] sm:$0xff]  ;;  %v326_v49 = vld [vmem:[%s978_s3 + $0x10] sm:$0xff]  ;;  %s683_s14 = scalar_lea.vmem %s682_s10, 1024 }
  0x19   : > { %v841_v0 = vld [vmem:[%s277_s18] sm:$0xff]  ;;  %v843_v1 = vld [vmem:[%s277_s18 + $0x10] sm:$0xff]  ;;  %v845_v2 = vld [vmem:[%s277_s18 + $0x8] sm:$0xff]  ;;  %v330_v43 = vsub.s32 0, %v880_v39 }
  0x1a   : > { %v283_v3 = vsel %vm282_vm0, %v841_v0, 0.0  ;;  %v289_v4 = vsel %vm282_vm0, %v843_v1, 0.0  ;;  %v851_v5 = vld [vmem:[%s277_s18 + $0x18] sm:$0xff]  ;;  %v286_v6 = vsel %vm282_vm0, %v845_v2, 0.0  ;;  %v349_v61 = vld [vmem:[%s979_s4 + $0x8] sm:$0xff]  ;;  %v348_v62 = vld [vmem:[%s979_s4] sm:$0xff] }
  0x1b   : > { %284 = vadd.xlane.f32.xlu0 %v283_v3  ;;  %290 = vadd.xlane.f32.xlu1 %v289_v4  ;;  %v292_v7 = vsel %vm282_vm0, %v851_v5, 0.0  ;;  %s270_s18 = sand.u32 1, %s729_s27  }
  0x1c   : > { %601 = vmatpush3.msra.mxu0 %v851_v5  ;;  %s579_s19 = sshll.u32 %s270_s18, 5  ;;  %s935_s30 = scalar_lea.sflag [#allocation4], %s270_s18 }
  0x1d   : > { %602 = vmatprep.subr.mxu0 %v739_v8  ;;  %s272_s20 = scalar_lea.vmem [#allocation3], %s579_s19 }
  0x1e   : > { %603 = vmatpush3.msra.mxu0 %v843_v1  ;;  %s513_s21 = sshll.u32 %s272_s20, 4  ;;  %s931_s21 = int_to_ptr.vmem [resolvable:$true] %s513_s21 }
  0x1f   : > { %287 = vadd.xlane.f32.xlu0 %v286_v6  ;;  %293 = vadd.xlane.f32.xlu1 %v292_v7  ;;  %v351_v7 = vld [vmem:[%s979_s4 + $0x18] sm:$0xff]  ;;  %s677_s6 = scalar_lea.vmem %s931_s21, 512  ;;  %p684_p0 = scmp.lt.s32.totalorder %s931_s21, %s682_s10 }
  0x20   : > { %604 = vmatprep.subr.mxu0 %v739_v8  ;;  %p678_p11 = scmp.ne.s32.totalorder %s931_s21, %s677_s6  ;;  %p685_p1 = scmp.lt.s32.totalorder %s683_s14, %s677_s6 }
  0x21   : > { %605 = vmatpush3.msra.mxu0 %v845_v2 }
  0x22   : > { %606 = vmatprep.subr.mxu0 %v739_v8  ;;  %v350_v8 = vld [vmem:[%s979_s4 + $0x10] sm:$0xff]  ;;  %p679_p12 = pnand %p678_p11, %p826_p5  ;;  %p686_p2 = por %p685_p1, %p684_p0 }
  0x23   : > { %607 = vmatpush3.msra.mxu0 %v841_v0 }
  0x24   : > { %609 = vmatmul.mubr.msk.f32.vlgmr.msra.gmra.mxu0 %vm383_vm2, %v380_v9  ;;  %p680_p13 = pneg %p679_p12 }
  0x26   : > { %p687_p3 = pnand %p686_p2, %p680_p13 }
  0xa4   : > { %v285_v10 = vpop.xlane.xlu0 %284  ;;  %v291_v11 = vpop.xlane.xlu1 %290 }
  0xa5   : > { %v295_v12 = vmul.f32 0.015625, %v285_v10  ;;  %v297_v14 = vmul.f32 0.015625, %v291_v11 }
  0xa7   : > { %v303_v20 = vmul.f32 %v299_v13, %v295_v12  ;;  %v305_v23 = vmul.f32 %v301_v15, %v297_v14 }
  0xa8   : > { %v288_v17 = vpop.xlane.xlu0 %287  ;;  %v294_v19 = vpop.xlane.xlu1 %293 }
  0xa9   : > { %v296_v21 = vmul.f32 0.015625, %v288_v17  ;;  %v298_v22 = vmul.f32 0.015625, %v294_v19  ;;  %v308_v26 = vsel %vm307_vm3, %v303_v20, 0.0  ;;  %v311_v29 = vsel %vm307_vm3, %v305_v23, 0.0 }
  0xab   : > { %v304_v24 = vmul.f32 %v300_v16, %v296_v21  ;;  %v306_v25 = vmul.f32 %v302_v18, %v298_v22 }
  0xad   : > { %v309_v27 = vsel %vm307_vm3, %v304_v24, 0.0  ;;  %v313_v30 = vsel %vm307_vm3, %v306_v25, 0.0 }
  0xae   : > { %v310_v28 = vadd.f32 %v309_v27, %v308_v26 }
  0xb0   : > { %v312_v31 = vadd.f32 %v311_v29, %v310_v28  ;;  %v382_v29 = vstv %s381_s17 }
  0xb2   : > { %v314_v32 = vadd.f32 %v313_v30, %v312_v31 }
  0xb4   : > { %v315_v33 = vrot.slane %v314_v32, 4 }
  0xb6   : > { %v316_v34 = vadd.f32 %v315_v33, %v314_v32 }
  0xb8   : > { %v317_v35 = vrot.slane %v316_v34, 2 }
  0xba   : > { %v318_v37 = vadd.f32 %v317_v35, %v316_v34 }
  0xbc   : > { %v319_v38 = vrot.slane %v318_v37, 1 }
  0xbe   : > { %v320_v41 = vadd.f32 %v319_v38, %v318_v37 }
  0xc0   : > { %v322_v42 = vadd.f32 %v321_v40, %v320_v41 }
  0xc2   : > { %v323_v44 = vmax.f32 %v322_v42, 0.0 }
  0xc4   : > { %v331_v47 = vrot.slane %v323_v44, %v330_v43 }
  0xc6   : > { %v333_v50 = vmul.f32 %v331_v47, %v325_v45  ;;  %v332_v51 = vmul.f32 %v331_v47, %v324_v46  ;;  %v335_v54 = vmul.f32 %v331_v47, %v327_v48  ;;  %v334_v55 = vmul.f32 %v331_v47, %v326_v49 }
  0xc8   : > { %v339_v52 = vsel %vm307_vm3, %v333_v50, 0.0  ;;  %v336_v53 = vsel %vm307_vm3, %v332_v51, 0.0  ;;  %v345_v56 = vsel %vm307_vm3, %v335_v54, 0.0  ;;  %v342_v57 = vsel %vm307_vm3, %v334_v55, 0.0 }
  0xc9   : > { %340 = vadd.xlane.f32.xlu1 %v339_v52  ;;  %337 = vadd.xlane.f32.xlu0 %v336_v53 }
  0xcd   : > { %346 = vadd.xlane.f32.xlu1 %v345_v56  ;;  %343 = vadd.xlane.f32.xlu0 %v342_v57 }
  0xe4   : > { %v453_v59 = vpop.f32.mrf.mxu0 }
  0xe5   : > { %v454_v30 = vadd.f32 %v453_v59, %v382_v29 }
  0xe6   : > { %v610_v60 = vpop.f32.mrf.mxu0 }
  0xe7   : > { %v587_v31 = vmul.f32 -1.442695, %v454_v30 }
 0x152   : > { %v341_v63 = vpop.xlane.xlu1 %340  ;;  %v338_v3 = vpop.xlane.xlu0 %337 }
 0x153   : > { %v353_v4 = vadd.f32 %v349_v61, %v341_v63  ;;  %v352_v6 = vadd.f32 %v348_v62, %v338_v3 }
 0x155   : > { %v583_v9 = vmul.f32 -1.442695, %v353_v4  ;;  %v582_v10 = vmul.f32 -1.442695, %v352_v6 }
 0x156   : > { %v347_v11 = vpop.xlane.xlu1 %346  ;;  %v344_v12 = vpop.xlane.xlu0 %343 }
 0x157   : > { %657 = vpow2.f32 %v583_v9  ;;  %v355_v13 = vadd.f32 %v351_v7, %v347_v11  ;;  %v354_v14 = vadd.f32 %v350_v8, %v344_v12 }
 0x158   : > { %659 = vpow2.f32 %v582_v10 }
 0x159   : > { %v585_v15 = vmul.f32 -1.442695, %v355_v13  ;;  %v584_v16 = vmul.f32 -1.442695, %v354_v14 }
 0x15b   : > { %661 = vpow2.f32 %v585_v15 }
 0x15c   : > { %663 = vpow2.f32 %v584_v16 }
 0x164   : > { %v658_v17 = vpop.eup %657 }
 0x165   : > { %v660_v18 = vpop.eup %659  ;;  %v369_v19 = vadd.f32 1.0, %v658_v17 }
 0x166   : > { %v368_v20 = vadd.f32 1.0, %v660_v18 }
 0x167   : > { %665 = vrcp.f32 %v369_v19 }
 0x168   : > { %v662_v21 = vpop.eup %661  ;;  %667 = vrcp.f32 %v368_v20 }
 0x169   : > { %v664_v22 = vpop.eup %663  ;;  %v371_v24 = vadd.f32 1.0, %v662_v21 }
 0x16a   : > { %v370_v23 = vadd.f32 1.0, %v664_v22 }
 0x16c   : > { %669 = vrcp.f32 %v370_v23 }
 0x16d   : > { %671 = vrcp.f32 %v371_v24 }
 0x16e   : > { %673 = vpow2.f32 %v587_v31 }
 0x174   : > { %v666_v25 = vpop.eup %665 }
 0x175   : > { %v668_v26 = vpop.eup %667  ;;  %470 = vperm.xlu1 %656, %v666_v25  }
 0x176   : > { %465 = vperm.xlu0 %655, %v668_v26  }
 0x179   : > { %v670_v27 = vpop.eup %669 }
 0x17a   : > { %475 = vperm.xlu1 %656, %v670_v27   ;;  %v672_v28 = vpop.eup %671 }
 0x17b   : > { %v674_v32 = vpop.eup %673 }
 0x17c   : > { %v460_v33 = vadd.f32 1.0, %v674_v32 }
 0x17e   : > { %480 = vperm.xlu1 %656, %v672_v28   ;;  %675 = vrcp.f32 %v460_v33 }
 0x18b   : > { %v676_v34 = vpop.eup %675 }
 0x18c   : > { %v486_v35 = vrot.slane %v676_v34, %v330_v43 }
 0x1f0   : > { %v471_v36 = vpop.permute.xlu1 %470 }
 0x1f1   : > { %v488_v37 = vadd.f32 %v486_v35, %v471_v36  ;;  %v466_v38 = vpop.permute.xlu0 %465 }
 0x1f2   : > { %v487_v40 = vadd.f32 %v486_v35, %v466_v38 }
 0x1f3   : > { %v492_v41 = vmul.f32 %v488_v37, %v845_v2 }
 0x1f4   : > { %v491_v42 = vmul.f32 %v487_v40, %v841_v0 }
 0x1f5   : > { %496 = vst.msk [vmem:[%s272_s20 + $0x8] sm:$0xff] %vm282_vm0, %v492_v41  ;;  %v476_v44 = vpop.permute.xlu1 %475 }
 0x1f6   : > { %495 = vst.msk [vmem:[%s272_s20] sm:$0xff] %vm282_vm0, %v491_v42  ;;  %v489_v45 = vadd.f32 %v486_v35, %v476_v44 }
 0x1f8   : > { %v493_v39 = vmul.f32 %v489_v45, %v843_v1 }
 0x1f9   : > { %v481_v43 = vpop.permute.xlu1 %480 }
 0x1fa   : > { %497 = vst.msk [vmem:[%s272_s20 + $0x10] sm:$0xff] %vm282_vm0, %v493_v39  ;;  %v490_v46 = vadd.f32 %v486_v35, %v481_v43 }
 0x1fc   : > { %v494_v0 = vmul.f32 %v490_v46, %v851_v5 }
 0x1fe   : > { %498 = vst.msk [vmem:[%s272_s20 + $0x18] sm:$0xff] %vm282_vm0, %v494_v0 }
 0x1ff   : > { %690 = shalt.err (!%p687_p3)
}
 0x200   : > { %s691_s15 = scalar_lea.hbm %s929_s25, 512  ;;  %s695_s18 = scalar_lea.hbm %s982_s7, 1024 }
 0x201   : > { %p692_p4 = scmp.ne.s32.totalorder %s929_s25, %s691_s15  ;;  %p696_p9 = scmp.lt.s32.totalorder %s929_s25, %s982_s7 }
 0x202   : > { %p697_p10 = scmp.lt.s32.totalorder %s695_s18, %s691_s15 }
 0x203   : > { %p693_p7 = pnand %p692_p4, %p826_p5 }
 0x204   : > { %p698_p11 = por %p697_p10, %p696_p9 }
 0x205   : > { %p694_p8 = pneg %p693_p7 }
 0x207   : > { %p699_p12 = pnand %p698_p11, %p694_p8 }
 0x209   : > { %702 = shalt.err (!%p699_p12)
}
 0x20a   : > { %s743_s22 = smov 128   ;;  %s744_s23 = smov 8  }
 0x20b   : > { %611 = dma.vmem_to_hbm [thread:$0]  (%p826_p5), %s931_s21, 512, %s929_s25, %s935_s30, %s743_s22, %s743_s22, %s744_s23  }
 0x20c PF: > { %p617_p13 = scmp.ge.s32.totalorder %s737_s29, 2  ;;  %s528_s24 = sand.u32 1, %s725_s26  }
 0x20d   : > { %s529_s6 = scalar_lea.sflag [#allocation4], %s528_s24 }
 0x20e   : > { %p614_p0 = pnand %p617_p13, %p830_p6 }
 0x210   : > { %p615_p1 = pneg %p614_p0 }
 0x212   : > { %720 = dma.done.wait (%p615_p1), %s529_s6, 512  }
 0x213   : > { %722 = vsyncadd (%p615_p1), %s529_s6, 4294966784  ;;  %p18_p2 = scmp.ge.s32.totalorder %s813_s8, 4   ;;  %s985_s26 = smov %s729_s27 }
 0x214   : > { %s986_s27 = smov %s733_s28  ;;  %s987_s28 = smov %s824_s11 }
 0x215   : > { %s988_s29 = smov %s813_s8  ;;  %20 = sbr.rel (!%p18_p2) target bundleno = 5 (0x5), region = 83 }
 0x21a   :  { %534 = vsyncpa [#allocation4], 1 }
 0x21b   :  { %536 = vsyncpa [#allocation4 + $0x1], 1 }

</bundles_post_ra>
